<compile_context>
chip_gen: v5e
topology: v5e:2x2
jax: 0.10.0
libtpu: 0.0.40
codegen_flags: <defaults>
</compile_context>

<pallas_src>
import functools

import jax
import jax.numpy as jnp
from jax import lax
from jax.experimental import pallas as pl
from jax.experimental.pallas import tpu as pltpu


def _conv1d_block_kernel(*refs, K, pad, T, n_groups, eps, mxu_dtype,
                         activation, use_im2col):
    # refs (with GroupNorm):    x, w, params, onehot_cg, onehot_gc, out, xp
    # refs (without GroupNorm): x, w, params, out, xp
    #   x_ref   : (B_blk, C_in, T)    native PyTorch layout
    #   w_ref   : (K*C_in, C_out)     mxu_dtype, resident across grid
    #   p_ref   : (3, C_out)          f32   rows = [bias, gamma, beta]
    #   cg_ref  : (C_out, G)          f32   one-hot channel->group
    #   gc_ref  : (G, C_out)          f32   one-hot group->channel
    #   o_ref   : (B_blk, C_out, T)
    #   xp_ref  : (B_blk, T+2*pad, C_in) VMEM scratch (x dtype)
    if n_groups is not None:
        x_ref, w_ref, p_ref, cg_ref, gc_ref, o_ref, xp_ref = refs
    else:
        x_ref, w_ref, p_ref, o_ref, xp_ref = refs
        cg_ref = gc_ref = None

    B_blk, C_in, _ = x_ref.shape
    C_out = o_ref.shape[1]

    # ---- input: (B_blk, C_in, T) -> channels-last, zero-padded scratch --------
    xt = jnp.swapaxes(x_ref[...], 1, 2)                      # (B_blk, T, C_in)
    if pad > 0:
        zpad = jnp.zeros((B_blk, pad, C_in), xt.dtype)
        xp_ref[:, :pad, :] = zpad                            # re-zeroed each step:
        xp_ref[:, pad + T:, :] = zpad                        # core-safe, 2 rows only
    xp_ref[:, pad:pad + T, :] = xt

    # ---- Conv1d as MXU matmul(s), f32 accumulation ----------------------------
    if use_im2col:
        # Small C_in: fuse the K taps so the contraction depth is K*C_in.
        cols = jnp.concatenate([xp_ref[:, k:k + T, :] for k in range(K)], axis=-1)
        cols = cols.reshape(B_blk * T, K * C_in).astype(mxu_dtype)
        acc = jnp.dot(cols, w_ref[...], preferred_element_type=jnp.float32)
    else:
        # Large C_in: accumulate K matmuls on static views of the resident
        # weight; avoids duplicating the input K times in VMEM.
        acc = jnp.zeros((B_blk * T, C_out), jnp.float32)
        for k in range(K):
            xk = xp_ref[:, k:k + T, :].reshape(B_blk * T, C_in).astype(mxu_dtype)
            acc = acc + jnp.dot(xk, w_ref[k * C_in:(k + 1) * C_in, :],
                                preferred_element_type=jnp.float32)

    acc = acc + p_ref[0:1, :]                                # conv bias
    y = acc.reshape(B_blk, T, C_out)

    # ---- GroupNorm (vectorized; group maps are resident wrapper constants) ----
    if n_groups is not None:
        cpg = C_out // n_groups
        ch_sum = jnp.sum(y, axis=1)                          # (B_blk, C_out)
        ch_sumsq = jnp.sum(y * y, axis=1)
        g_sum = jnp.dot(ch_sum, cg_ref[...],
                        preferred_element_type=jnp.float32)  # (B_blk, G)
        g_sumsq = jnp.dot(ch_sumsq, cg_ref[...],
                          preferred_element_type=jnp.float32)
        cnt = float(cpg * T)
        mean_g = g_sum / cnt
        # clamp E[x^2]-mean^2 so catastrophic cancellation can't go negative
        var_g = jnp.maximum(g_sumsq / cnt - mean_g * mean_g, 0.0)
        inv_g = lax.rsqrt(var_g + eps)
        mean_c = jnp.dot(mean_g, gc_ref[...],
                         preferred_element_type=jnp.float32)  # (B_blk, C_out)
        inv_c = jnp.dot(inv_g, gc_ref[...],
                        preferred_element_type=jnp.float32)
        scale = inv_c * p_ref[1:2, :]                        # * gamma
        shift = p_ref[2:3, :] - mean_c * scale               # + beta
        y = y * scale[:, None, :] + shift[:, None, :]

    # ---- activation ------------------------------------------------------------
    if activation == "ReLU":
        y = jnp.maximum(y, 0.0)
    else:  # Mish: x*tanh(softplus(x)) == x - 2x/(e*(e+2)+2), e = exp(x); saturation-safe
        e = jnp.exp(y)
        y = y - (2.0 * y) / (e * (e + 2.0) + 2.0)

    # ---- store directly in the module's native (B, C_out, T) layout -----------
    o_ref[...] = jnp.swapaxes(y, 1, 2).astype(o_ref.dtype)


def _vmem_budget():
    """Returns (budget for accounted per-step tensors, scoped vmem_limit_bytes)."""
    try:
        cap = int(pltpu.get_tpu_info().vmem_capacity_bytes)  # 128 MiB v5e/v6e, 64 MiB v7x
    except Exception:
        cap = 64 << 20                                       # v7x-safe fallback
    limit = min(int(cap * 0.7), 96 << 20)                    # scoped limit we request
    return int(limit * 0.6), limit                           # headroom for compiler scratch


def _pick_batch_block(B, T, C_in, C_out, K, pad, *, x_bytes, out_bytes,
                      mxu_bytes, use_im2col, budget_bytes):
    Tp = T + 2 * pad
    per_b = (2 * C_in * T * x_bytes                          # input tile (double-buffered)
             + 2 * C_out * T * out_bytes                     # output tile (double-buffered)
             + Tp * C_in * x_bytes                           # padded-input scratch
             + (K * C_in * T * mxu_bytes if use_im2col else 0)   # im2col columns
             + 3 * T * C_out * 4)                            # f32 acc / y / elementwise temps
    fixed = (2 * K * C_in * C_out * mxu_bytes                # resident weight (2 buffers)
             + 8 * C_out * 4 + (64 << 10))                   # params, one-hots, slack
    blk = max(1, min(B, max(budget_bytes - fixed, per_b) // per_b))
    # Keep >= min(B, 4) grid steps: feeds both v7x TensorCores and the pipeline.
    blk = min(blk, max(1, B // min(B, 4)))
    while B % blk:
        blk -= 1
    return blk


def conv1d_block(x, weight, bias, gamma=None, beta=None, *, n_groups=None,
                 eps=1e-5, activation="Mish", mxu_dtype=jnp.bfloat16,
                 out_dtype=None, batch_block=None, im2col_max_cin=128):
    """Conv1d(padding=K//2) -> GroupNorm(n_groups) -> Mish/ReLU (PyTorch semantics).

    x: (B, C_in, T), weight: (C_out, C_in, K), bias/gamma/beta: (C_out,).
    Returns (B, C_out, T) in out_dtype (default x.dtype).
    """
    B, C_in, T = x.shape
    C_out, C_in_w, K = weight.shape
    assert C_in_w == C_in
    assert K % 2 == 1, "padding=K//2 only preserves length for odd K"
    if n_groups is not None:
        assert C_out % n_groups == 0, "C_out must be divisible by n_groups"
    if activation not in ("Mish", "ReLU"):
        raise ValueError("Unknown activation type for Conv1dBlock")
    pad = K // 2
    out_dtype = jnp.dtype(out_dtype if out_dtype is not None else x.dtype)

    if gamma is None:
        gamma = jnp.ones((C_out,), jnp.float32)
    if beta is None:
        beta = jnp.zeros((C_out,), jnp.float32)

    # Resident weight: (C_out, C_in, K) -> (K*C_in, C_out); row k*C_in+ci matches
    # the in-kernel tap-major / channel-minor contraction ordering.
    w2 = jnp.transpose(weight, (2, 1, 0)).reshape(K * C_in, C_out).astype(mxu_dtype)
    # bias / gamma / beta packed into ONE small resident slab (single DMA).
    params = jnp.stack([bias, gamma, beta], axis=0).astype(jnp.float32)

    use_im2col = C_in < im2col_max_cin
    budget_bytes, vmem_limit = _vmem_budget()
    B_blk = batch_block or _pick_batch_block(
        B, T, C_in, C_out, K, pad,
        x_bytes=jnp.dtype(x.dtype).itemsize,
        out_bytes=out_dtype.itemsize,
        mxu_bytes=jnp.dtype(mxu_dtype).itemsize,
        use_im2col=use_im2col, budget_bytes=budget_bytes)
    assert B % B_blk == 0

    in_specs = [
        pl.BlockSpec((B_blk, C_in, T), lambda b: (b, 0, 0)),   # native-layout input
        pl.BlockSpec((K * C_in, C_out), lambda b: (0, 0)),     # resident weight
        pl.BlockSpec((3, C_out), lambda b: (0, 0)),            # bias/gamma/beta
    ]
    args = [x, w2, params]
    if n_groups is not None:
        G = n_groups
        cpg = C_out // G
        gid = jnp.arange(C_out, dtype=jnp.int32) // cpg
        onehot_cg = (gid[:, None] == jnp.arange(G, dtype=jnp.int32)[None, :]
                     ).astype(jnp.float32)                     # (C_out, G)
        onehot_gc = jnp.transpose(onehot_cg)                   # (G, C_out)
        in_specs += [pl.BlockSpec((C_out, G), lambda b: (0, 0)),
                     pl.BlockSpec((G, C_out), lambda b: (0, 0))]
        args += [onehot_cg, onehot_gc]

    kernel = functools.partial(
        _conv1d_block_kernel, K=K, pad=pad, T=T, n_groups=n_groups, eps=eps,
        mxu_dtype=mxu_dtype, activation=activation, use_im2col=use_im2col)

    flops = 2 * B * T * K * C_in * C_out
    transcendentals = B * T * C_out if activation == "Mish" else 0
    bytes_accessed = (x.size * jnp.dtype(x.dtype).itemsize
                      + w2.size * jnp.dtype(mxu_dtype).itemsize
                      + params.size * 4
                      + B * C_out * T * out_dtype.itemsize)

    return pl.pallas_call(
        kernel,
        out_shape=jax.ShapeDtypeStruct((B, C_out, T), out_dtype),
        grid=(B // B_blk,),
        in_specs=in_specs,
        out_specs=pl.BlockSpec((B_blk, C_out, T), lambda b: (b, 0, 0)),
        scratch_shapes=[pltpu.VMEM((B_blk, T + 2 * pad, C_in), x.dtype)],
        compiler_params=pltpu.CompilerParams(
            dimension_semantics=("parallel",),
            vmem_limit_bytes=int(vmem_limit)),
        cost_estimate=pl.CostEstimate(
            flops=flops, transcendentals=transcendentals,
            bytes_accessed=bytes_accessed),
    )(*args)


def _reference(x, weight, bias, gamma, beta, *, n_groups, eps=1e-5,
               mxu_dtype=jnp.float32, activation="Mish"):
    """Pure-JAX reference mirroring the PyTorch module."""
    K = weight.shape[-1]
    pad = K // 2
    y = lax.conv_general_dilated(
        x.astype(mxu_dtype), weight.astype(mxu_dtype),
        window_strides=(1,), padding=[(pad, pad)],
        dimension_numbers=("NCW", "OIW", "NCW"),
        preferred_element_type=jnp.float32)
    y = y + bias[None, :, None]
    if n_groups is not None:
        B, C, T = y.shape
        yg = y.reshape(B, n_groups, C // n_groups, T)
        mean = jnp.mean(yg, axis=(2, 3), keepdims=True)
        var = jnp.mean((yg - mean) ** 2, axis=(2, 3), keepdims=True)
        yg = (yg - mean) * lax.rsqrt(var + eps)
        y = yg.reshape(B, C, T) * gamma[None, :, None] + beta[None, :, None]
    if activation == "ReLU":
        return jnp.maximum(y, 0.0)
    sp = jnp.log1p(jnp.exp(y))
    return y * jnp.tanh(sp)


if __name__ == "__main__":
    # Conv1dBlock(inp_channels=4, out_channels=8, kernel_size=3, n_groups=2)
    # applied to x of shape (batch, channels, horizon).
    B, C_in, C_out, K, T, G = 2, 4, 8, 3, 16, 2
    eps = 1e-5

    key = jax.random.PRNGKey(0)
    kx, kw, kb, kg, kbt = jax.random.split(key, 5)

    x = jax.random.normal(kx, (B, C_in, T), dtype=jnp.float32)
    fan_in = C_in * K
    bound = 1.0 / float(fan_in) ** 0.5
    weight = jax.random.uniform(kw, (C_out, C_in, K), jnp.float32, -bound, bound)
    bias = jax.random.uniform(kb, (C_out,), jnp.float32, -bound, bound)
    gamma = 1.0 + 0.1 * jax.random.normal(kg, (C_out,), dtype=jnp.float32)
    beta = 0.1 * jax.random.normal(kbt, (C_out,), dtype=jnp.float32)

    # 1) Exact path (f32 MXU operands) vs f32 reference.
    out_f32 = jax.block_until_ready(
        conv1d_block(x, weight, bias, gamma, beta, n_groups=G, eps=eps,
                     mxu_dtype=jnp.float32))
    ref_f32 = _reference(x, weight, bias, gamma, beta, n_groups=G, eps=eps)
    assert out_f32.shape == (B, C_out, T)
    assert jnp.allclose(out_f32, ref_f32, atol=1e-4, rtol=1e-4), "f32 mismatch"

    # 2) Fast path (bf16 MXU operands, f32 accumulate/norm/activation) vs a
    #    reference that rounds the matmul operands identically.
    out_bf16 = jax.block_until_ready(
        conv1d_block(x, weight, bias, gamma, beta, n_groups=G, eps=eps,
                     mxu_dtype=jnp.bfloat16))
    ref_bf16 = _reference(x, weight, bias, gamma, beta, n_groups=G, eps=eps,
                          mxu_dtype=jnp.bfloat16)
    assert jnp.allclose(out_bf16, ref_bf16, atol=5e-3, rtol=5e-3), "bf16 mismatch"

    # 3) GroupNorm-disabled branch (n_groups=None).
    out_nog = jax.block_until_ready(
        conv1d_block(x, weight, bias, None, None, n_groups=None, eps=eps,
                     mxu_dtype=jnp.float32))
    ref_nog = _reference(x, weight, bias, None, None, n_groups=None, eps=eps)
    assert jnp.allclose(out_nog, ref_nog, atol=1e-4, rtol=1e-4), "no-GN mismatch"

    print("KERNEL_OK")
</pallas_src>

<mosaic_0001>
module attributes {stable_mosaic.version = 11 : i64} {
  func.func @_conv1d_block_kernel(%arg0: i32, %arg1: memref<1x4x16xf32, #tpu.memory_space<vmem>>, %arg2: memref<12x8xf32, #tpu.memory_space<vmem>>, %arg3: memref<3x8xf32, #tpu.memory_space<vmem>>, %arg4: memref<8x2xf32, #tpu.memory_space<vmem>>, %arg5: memref<2x8xf32, #tpu.memory_space<vmem>>, %arg6: memref<1x8x16xf32, #tpu.memory_space<vmem>>, %arg7: memref<1x18x4xf32, #tpu.memory_space<vmem>>) attributes {dimension_semantics = [#tpu.dimension_semantics<parallel>], iteration_bounds = array<i64: 2>, scalar_prefetch = 0 : i64, scratch_operands = 1 : i64, tpu.core_type = #tpu.core_type<tc>, window_params = [{transform_indices = @transform_0, window_bounds = array<i64: 1, 4, 16>}, {pipeline_mode = #tpu.pipeline_mode<synchronous>, transform_indices = @transform_1, window_bounds = array<i64: 12, 8>}, {pipeline_mode = #tpu.pipeline_mode<synchronous>, transform_indices = @transform_2, window_bounds = array<i64: 3, 8>}, {pipeline_mode = #tpu.pipeline_mode<synchronous>, transform_indices = @transform_3, window_bounds = array<i64: 8, 2>}, {pipeline_mode = #tpu.pipeline_mode<synchronous>, transform_indices = @transform_4, window_bounds = array<i64: 2, 8>}, {transform_indices = @transform_5, window_bounds = array<i64: 1, 8, 16>}]} {
    %c0 = arith.constant 0 : index
    %c0_0 = arith.constant 0 : index
    %c0_1 = arith.constant 0 : index
    %0 = vector.load %arg1[%c0, %c0_0, %c0_1] : memref<1x4x16xf32, #tpu.memory_space<vmem>>, vector<1x4x16xf32>
    %1 = tpu.transpose %0, [0, 2, 1] : vector<1x4x16xf32> -> vector<1x16x4xf32>
    %cst = arith.constant 0.000000e+00 : f32
    %2 = vector.broadcast %cst : f32 to vector<1x1x4xf32>
    %c0_2 = arith.constant 0 : index
    %c0_3 = arith.constant 0 : index
    %c0_4 = arith.constant 0 : index
    %3 = vector.load %arg7[%c0_2, %c0_3, %c0_4] : memref<1x18x4xf32, #tpu.memory_space<vmem>>, vector<1x1x4xf32>
    tpu.vector_store %arg7[%c0_2, %c0_3, %c0_4], %2 {strides = array<i32>} : memref<1x18x4xf32, #tpu.memory_space<vmem>>, vector<1x1x4xf32>,
    %c0_5 = arith.constant 0 : index
    %c17 = arith.constant 17 : index
    %c0_6 = arith.constant 0 : index
    %4 = vector.load %arg7[%c0_5, %c17, %c0_6] : memref<1x18x4xf32, #tpu.memory_space<vmem>>, vector<1x1x4xf32>
    tpu.vector_store %arg7[%c0_5, %c17, %c0_6], %2 {strides = array<i32>} : memref<1x18x4xf32, #tpu.memory_space<vmem>>, vector<1x1x4xf32>,
    %c0_7 = arith.constant 0 : index
    %c1 = arith.constant 1 : index
    %c0_8 = arith.constant 0 : index
    %5 = vector.load %arg7[%c0_7, %c1, %c0_8] : memref<1x18x4xf32, #tpu.memory_space<vmem>>, vector<1x16x4xf32>
    tpu.vector_store %arg7[%c0_7, %c1, %c0_8], %1 {strides = array<i32>} : memref<1x18x4xf32, #tpu.memory_space<vmem>>, vector<1x16x4xf32>,
    %c0_9 = arith.constant 0 : index
    %c0_10 = arith.constant 0 : index
    %c0_11 = arith.constant 0 : index
    %6 = vector.load %arg7[%c0_9, %c0_10, %c0_11] : memref<1x18x4xf32, #tpu.memory_space<vmem>>, vector<1x16x4xf32>
    %c0_12 = arith.constant 0 : index
    %c1_13 = arith.constant 1 : index
    %c0_14 = arith.constant 0 : index
    %7 = vector.load %arg7[%c0_12, %c1_13, %c0_14] : memref<1x18x4xf32, #tpu.memory_space<vmem>>, vector<1x16x4xf32>
    %c0_15 = arith.constant 0 : index
    %c2 = arith.constant 2 : index
    %c0_16 = arith.constant 0 : index
    %8 = vector.load %arg7[%c0_15, %c2, %c0_16] : memref<1x18x4xf32, #tpu.memory_space<vmem>>, vector<1x16x4xf32>
    %9 = tpu.concatenate %6, %7, %8 in 2 : vector<1x16x4xf32>, vector<1x16x4xf32>, vector<1x16x4xf32> -> vector<1x16x12xf32>
    %10 = vector.shape_cast %9 : vector<1x16x12xf32> to vector<16x12xf32>
    %c0_17 = arith.constant 0 : index
    %c0_18 = arith.constant 0 : index
    %11 = vector.load %arg2[%c0_17, %c0_18] : memref<12x8xf32, #tpu.memory_space<vmem>>, vector<12x8xf32>
    %cst_19 = arith.constant dense<0.000000e+00> : vector<16x8xf32>
    %12 = tpu.matmul %10, %11, %cst_19 {dimension_numbers = #tpu.dot_dimension_numbers<[1], [0], [0], [1], [0, 0, 1, 1], [], []>} : vector<16x12xf32>, vector<12x8xf32>, vector<16x8xf32> -> vector<16x8xf32>
    %c0_20 = arith.constant 0 : index
    %c0_21 = arith.constant 0 : index
    %13 = vector.load %arg3[%c0_20, %c0_21] : memref<3x8xf32, #tpu.memory_space<vmem>>, vector<1x8xf32>
    %14 = vector.broadcast %13 : vector<1x8xf32> to vector<16x8xf32>
    %15 = arith.addf %12, %14 : vector<16x8xf32>
    %16 = vector.shape_cast %15 : vector<16x8xf32> to vector<1x16x8xf32>
    %cst_22 = arith.constant dense<0.000000e+00> : vector<1x8xf32>
    %17 = vector.multi_reduction <add>, %16, %cst_22 [1] : vector<1x16x8xf32> to vector<1x8xf32>
    %18 = arith.mulf %16, %16 : vector<1x16x8xf32>
    %cst_23 = arith.constant dense<0.000000e+00> : vector<1x8xf32>
    %19 = vector.multi_reduction <add>, %18, %cst_23 [1] : vector<1x16x8xf32> to vector<1x8xf32>
    %c0_24 = arith.constant 0 : index
    %c0_25 = arith.constant 0 : index
    %20 = vector.load %arg4[%c0_24, %c0_25] : memref<8x2xf32, #tpu.memory_space<vmem>>, vector<8x2xf32>
    %cst_26 = arith.constant dense<0.000000e+00> : vector<1x2xf32>
    %21 = tpu.matmul %17, %20, %cst_26 {dimension_numbers = #tpu.dot_dimension_numbers<[1], [0], [0], [1], [0, 0, 1, 1], [], []>} : vector<1x8xf32>, vector<8x2xf32>, vector<1x2xf32> -> vector<1x2xf32>
    %c0_27 = arith.constant 0 : index
    %c0_28 = arith.constant 0 : index
    %22 = vector.load %arg4[%c0_27, %c0_28] : memref<8x2xf32, #tpu.memory_space<vmem>>, vector<8x2xf32>
    %cst_29 = arith.constant dense<0.000000e+00> : vector<1x2xf32>
    %23 = tpu.matmul %19, %22, %cst_29 {dimension_numbers = #tpu.dot_dimension_numbers<[1], [0], [0], [1], [0, 0, 1, 1], [], []>} : vector<1x8xf32>, vector<8x2xf32>, vector<1x2xf32> -> vector<1x2xf32>
    %cst_30 = arith.constant 6.400000e+01 : f32
    %24 = vector.broadcast %cst_30 : f32 to vector<1x2xf32>
    %25 = arith.divf %21, %24 : vector<1x2xf32>
    %cst_31 = arith.constant 6.400000e+01 : f32
    %26 = vector.broadcast %cst_31 : f32 to vector<1x2xf32>
    %27 = arith.divf %23, %26 : vector<1x2xf32>
    %28 = arith.mulf %25, %25 : vector<1x2xf32>
    %29 = arith.subf %27, %28 : vector<1x2xf32>
    %cst_32 = arith.constant 0.000000e+00 : f32
    %30 = vector.broadcast %cst_32 : f32 to vector<1x2xf32>
    %31 = arith.maximumf %29, %30 : vector<1x2xf32>
    %cst_33 = arith.constant 9.99999974E-6 : f32
    %32 = vector.broadcast %cst_33 : f32 to vector<1x2xf32>
    %33 = arith.addf %31, %32 : vector<1x2xf32>
    %34 = math.rsqrt %33 : vector<1x2xf32>
    %c0_34 = arith.constant 0 : index
    %c0_35 = arith.constant 0 : index
    %35 = vector.load %arg5[%c0_34, %c0_35] : memref<2x8xf32, #tpu.memory_space<vmem>>, vector<2x8xf32>
    %cst_36 = arith.constant dense<0.000000e+00> : vector<1x8xf32>
    %36 = tpu.matmul %25, %35, %cst_36 {dimension_numbers = #tpu.dot_dimension_numbers<[1], [0], [0], [1], [0, 0, 1, 1], [], []>} : vector<1x2xf32>, vector<2x8xf32>, vector<1x8xf32> -> vector<1x8xf32>
    %c0_37 = arith.constant 0 : index
    %c0_38 = arith.constant 0 : index
    %37 = vector.load %arg5[%c0_37, %c0_38] : memref<2x8xf32, #tpu.memory_space<vmem>>, vector<2x8xf32>
    %cst_39 = arith.constant dense<0.000000e+00> : vector<1x8xf32>
    %38 = tpu.matmul %34, %37, %cst_39 {dimension_numbers = #tpu.dot_dimension_numbers<[1], [0], [0], [1], [0, 0, 1, 1], [], []>} : vector<1x2xf32>, vector<2x8xf32>, vector<1x8xf32> -> vector<1x8xf32>
    %c1_40 = arith.constant 1 : index
    %c0_41 = arith.constant 0 : index
    %39 = vector.load %arg3[%c1_40, %c0_41] : memref<3x8xf32, #tpu.memory_space<vmem>>, vector<1x8xf32>
    %40 = arith.mulf %38, %39 : vector<1x8xf32>
    %c2_42 = arith.constant 2 : index
    %c0_43 = arith.constant 0 : index
    %41 = vector.load %arg3[%c2_42, %c0_43] : memref<3x8xf32, #tpu.memory_space<vmem>>, vector<1x8xf32>
    %42 = arith.mulf %36, %40 : vector<1x8xf32>
    %43 = arith.subf %41, %42 : vector<1x8xf32>
    %44 = vector.shape_cast %40 : vector<1x8xf32> to vector<1x1x8xf32>
    %45 = vector.broadcast %44 : vector<1x1x8xf32> to vector<1x16x8xf32>
    %46 = arith.mulf %16, %45 : vector<1x16x8xf32>
    %47 = vector.shape_cast %43 : vector<1x8xf32> to vector<1x1x8xf32>
    %48 = vector.broadcast %47 : vector<1x1x8xf32> to vector<1x16x8xf32>
    %49 = arith.addf %46, %48 : vector<1x16x8xf32>
    %50 = math.exp %49 : vector<1x16x8xf32>
    %cst_44 = arith.constant 2.000000e+00 : f32
    %51 = vector.broadcast %cst_44 : f32 to vector<1x16x8xf32>
    %52 = arith.mulf %51, %49 : vector<1x16x8xf32>
    %cst_45 = arith.constant 2.000000e+00 : f32
    %53 = vector.broadcast %cst_45 : f32 to vector<1x16x8xf32>
    %54 = arith.addf %50, %53 : vector<1x16x8xf32>
    %55 = arith.mulf %50, %54 : vector<1x16x8xf32>
    %cst_46 = arith.constant 2.000000e+00 : f32
    %56 = vector.broadcast %cst_46 : f32 to vector<1x16x8xf32>
    %57 = arith.addf %55, %56 : vector<1x16x8xf32>
    %58 = arith.divf %52, %57 : vector<1x16x8xf32>
    %59 = arith.subf %49, %58 : vector<1x16x8xf32>
    %60 = tpu.transpose %59, [0, 2, 1] : vector<1x16x8xf32> -> vector<1x8x16xf32>
    %c0_47 = arith.constant 0 : index
    %c0_48 = arith.constant 0 : index
    %c0_49 = arith.constant 0 : index
    %61 = vector.load %arg6[%c0_47, %c0_48, %c0_49] : memref<1x8x16xf32, #tpu.memory_space<vmem>>, vector<1x8x16xf32>
    tpu.vector_store %arg6[%c0_47, %c0_48, %c0_49], %60 {strides = array<i32>} : memref<1x8x16xf32, #tpu.memory_space<vmem>>, vector<1x8x16xf32>,
    return
  }
  func.func @transform_0(%arg0: i32) -> (i32, i32, i32) {
    %c0_i32 = arith.constant 0 : i32
    %c0_i32_0 = arith.constant 0 : i32
    %c0_i32_1 = arith.constant 0 : i32
    return %arg0, %c0_i32, %c0_i32_0 : i32, i32, i32
  }
  func.func @transform_1(%arg0: i32) -> (i32, i32) {
    %c0_i32 = arith.constant 0 : i32
    %c0_i32_0 = arith.constant 0 : i32
    %c0_i32_1 = arith.constant 0 : i32
    return %c0_i32, %c0_i32_0 : i32, i32
  }
  func.func @transform_2(%arg0: i32) -> (i32, i32) {
    %c0_i32 = arith.constant 0 : i32
    %c0_i32_0 = arith.constant 0 : i32
    %c0_i32_1 = arith.constant 0 : i32
    return %c0_i32, %c0_i32_0 : i32, i32
  }
  func.func @transform_3(%arg0: i32) -> (i32, i32) {
    %c0_i32 = arith.constant 0 : i32
    %c0_i32_0 = arith.constant 0 : i32
    %c0_i32_1 = arith.constant 0 : i32
    return %c0_i32, %c0_i32_0 : i32, i32
  }
  func.func @transform_4(%arg0: i32) -> (i32, i32) {
    %c0_i32 = arith.constant 0 : i32
    %c0_i32_0 = arith.constant 0 : i32
    %c0_i32_1 = arith.constant 0 : i32
    return %c0_i32, %c0_i32_0 : i32, i32
  }
  func.func @transform_5(%arg0: i32) -> (i32, i32, i32) {
    %c0_i32 = arith.constant 0 : i32
    %c0_i32_0 = arith.constant 0 : i32
    %c0_i32_1 = arith.constant 0 : i32
    return %arg0, %c0_i32, %c0_i32_0 : i32, i32, i32
  }
}

</mosaic_0001>

<bundles_post_ra>
// kernel: tpu_custom_call.1
= control target key start
LH: loop header
LB: loop body
LE: loop exit
PB: predicated region body
PF: predicated region fallthrough
CT: control target
= control target key end

     0   :  { %10 = vsyncpa [#allocation4], 0  ;;  %s935_s0 = inlined_call_operand.vmem [shape: f32[2,4,16], index: 0, kind: input, shape index: {}]   ;;  %s936_s1 = inlined_call_operand.vmem [shape: f32[12,8], index: 1, kind: input, shape index: {}]   ;;  %s937_s2 = inlined_call_operand.vmem [shape: f32[3,8], index: 2, kind: input, shape index: {}]   ;;  %s938_s3 = inlined_call_operand.vmem [shape: f32[8,2], index: 3, kind: input, shape index: {}]   ;;  %s939_s4 = inlined_call_operand.vmem [shape: f32[2,8], index: 4, kind: input, shape index: {}]   ;;  %s940_s5 = inlined_call_operand.hbm [shape: f32[2,8,16], index: 5, kind: output, shape index: {}]  }
   0x1   :  { %12 = vsyncpa [#allocation4 + $0x1], 0  ;;  %s803_s18 = smov 0   ;;  %s805_s19 = smov 0  }
   0x2   :  { %s807_s20 = smov 0   ;;  %s809_s21 = smov 0  }
   0x3 LB: > { %s824_s22 = sadd.s32 4294967295, %s767_s21   ;;  %s630_s23 = sadd.s32 4294967294, %s767_s21   ;;  %s767_s21 = sphi %s809_s21, %s946_s21   ;;  %s763_s20 = sphi %s807_s20, %s945_s20   ;;  %s759_s19 = sphi %s805_s19, %s944_s19   ;;  %s755_s18 = sphi %s803_s18, %s943_s18  }
   0x4   : > { %s828_s24 = sadd.s32 1, %s767_s21   ;;  %s135_s25 = sadd.s32 1, %s763_s20 }
   0x5   : > { %s132_s26 = ssub.s32 %s767_s21, %s828_s24  ;;  %p145_p0 = scmp.ne.s32.totalorder %s763_s20, %s759_s19 }
   0x6   : > { %p133_p1 = scmp.eq.s32.totalorder %s132_s26, 0  ;;  %p146_p2 = scmp.eq.s32.totalorder %s824_s22, 1 }
   0x7   : > { %p151_p3 = scmp.ne.s32.totalorder %s759_s19, %s755_s18  ;;  %p152_p4 = scmp.eq.s32.totalorder %s630_s23, 1 }
   0x8   : > { %s839_s27 = scalar_select %p133_p1, %s763_s20, %s135_s25  }
   0x9   : > { %p841_p5 = por %p146_p2, %p145_p0  ;;  %p845_p6 = por %p152_p4, %p151_p3 }
   0xa   : > { %p633_p7 = scmp.ge.s32.totalorder %s767_s21, 1  ;;  %p189_p8 = scmp.lt.s32.totalorder %s767_s21, 3 }
   0xc   : > { %p190_p9 = pnand %p633_p7, %p189_p8 }
   0xd   : > { %p216_p10 = scmp.lt.s32.totalorder (!%p190_p9), %s824_s22, 1  ;;  %s770_s10 = smov (!%p190_p9), 4  }
   0xe   : > { %193 = sbr.rel (%p190_p9) target bundleno = 963 (0x3c3), region = 40  ;;  %s771_s11 = smov (!%p190_p9), 8  }
   0xf   : > { %s646_s12 = sshll.u32 (!%p190_p9), %s824_s22, 3  ;;  %s725_s7 = scalar_lea.hbm (!%p190_p9), %s940_s5, 16 }
  0x10   : > { %s566_s15 = scalar_lea.hbm (!%p190_p9), %s940_s5, %s646_s12 }
  0x11   : > { %s570_s23 = sshll.u32 (!%p190_p9), %s566_s15, 4  ;;  %s571_s23 = int_to_ptr.hbm [resolvable:$true] %s570_s23 }
  0x12   : > { %s719_s26 = sshra.s32 (!%p190_p9), %s571_s23, 4  ;;  %s720_s26 = int_to_ptr.hbm [resolvable:$true] %s719_s26 }
  0x13   : > { %s217_s30 = scalar_select %p216_p10, %s824_s22, 1  ;;  %vm253_vm0 = vcmask 24576   ;;  %v769_v1 = vmov 0.0   ;;  %vm256_vm1 = vcmask 31744   ;;  %v287_v8 = vld [vmem:[%s936_s1 + $0x8] sm:$0xf] }
  0x14   : > { %254 = vst.msk [vmem:[#allocation2] sm:$0x1] %vm253_vm0, %v769_v1  ;;  %vm297_vm2 = vcmask 1043456   ;;  %v286_v9 = vld [vmem:[%s936_s1] sm:$0xff]  ;;  %vm283_vm3 = vcmask 64512   ;;  %vm290_vm4 = vcmask 97280   ;;  %p726_p0 = scmp.lt.s32.totalorder %s720_s26, %s940_s5 }
  0x15   : > { %s635_s6 = sshll.u32 %s217_s30, 2  ;;  %255 = vst.msk [vmem:[#allocation2 + $0x11] sm:$0x1] %vm253_vm0, %v769_v1  ;;  %636 = vmatpush.msk.msra.mxu0 %vm297_vm2, %v287_v8  ;;  %v344_v20 = vld [vmem:[%s938_s3] sm:$0xff]  ;;  %vm419_vm5 = vcmask 1041408   ;;  %v772_v47 = vmov 64.0  }
  0x16   : > { %s219_s9 = scalar_lea.vmem %s935_s0, %s635_s6  ;;  %363 = vmatpush.msra.mxu1 %v344_v20  ;;  %386 = vmatpush.msra.mxu2 %v344_v20  ;;  %v692_v22 = vld [vmem:[%s937_s2] ss:$0 sm:$0xff]  ;;  %693 = vrcp.f32 %v772_v47  ;;  %vm415_vm7 = vcmask 15360   ;;  %s721_s30 = scalar_lea.hbm %s720_s26, 8 }
  0x17   : > { %v220_v0 = vld [vmem:[%s219_s9] sm:$0xf]  ;;  %316 = vmatpush.msra.mxu0 %v286_v9  ;;  %p722_p11 = scmp.ne.s32.totalorder %s720_s26, %s721_s30  ;;  %p727_p1 = scmp.lt.s32.totalorder %s725_s7, %s721_s30 }
  0x18   : > { %221 = vxpose.xlu0.b32.start.end [1/1] (short) (narrow) %v220_v0, 16  ;;  %v414_v46 = vld [vmem:[%s939_s4] sm:$0x3]  ;;  %v468_v9 = vld [vmem:[%s937_s2 + $0x2] sm:$0x1] }
  0x19   : > { %641 = vmatpush.msk.msra.mxu3 %vm419_vm5, %v414_v46  ;;  %643 = vmatpush.msk.msrb.mxu1 %vm419_vm5, %v414_v46  ;;  %p723_p12 = pnand %p722_p11, %p841_p5  ;;  %p728_p2 = por %p727_p1, %p726_p0 }
  0x1b   : > { %p724_p13 = pneg %p723_p12 }
  0x1c   : > { %v694_v48 = vpop.eup %693 }
  0x1d   : > { %v392_v49 = vmul.f32 64.0, %v694_v48  ;;  %vm396_vm6 = vweird.f32 %v694_v48  ;;  %p729_p3 = pnand %p728_p2, %p724_p13 }
  0x1f   : > { %v393_v50 = vsub.f32 1.0, %v392_v49 }
  0x21   : > { %v394_v51 = vmul.f32 %v694_v48, %v393_v50 }
  0x23   : > { %v395_v52 = vadd.f32 %v694_v48, %v394_v51 }
  0x25   : > { %v397_v53 = vsel %vm396_vm6, %v694_v48, %v395_v52 }
  0xbc   : > { %v237_v2 = vpop.trf.xlu0 }
  0xbd   : > { %257 = vst.msk [vmem:[#allocation2 + $0x1] sm:$0xff] %vm256_vm1, %v237_v2 }
  0xc4   : > { %v238_v3 = vpop.trf.xlu0  ;;  %v261_v4 = vld [vmem:[#allocation2 + $0x1] sm:$0xff] }
  0xc5   : > { %258 = vst.msk [vmem:[#allocation2 + $0x9] sm:$0xff] %vm256_vm1, %v238_v3  ;;  %267 = vrot.lane.b32.xlu0 %v261_v4, %s770_s10  ;;  %v259_v11 = vld [vmem:[#allocation2] sm:$0xff] }
  0xcc   : > { %v264_v5 = vld [vmem:[#allocation2 + $0xa] sm:$0xff]  ;;  %v263_v6 = vld [vmem:[#allocation2 + $0x2] sm:$0xff] }
  0xcd   : > { %277 = vrot.lane.b32.xlu2 %v264_v5, %s771_s11  ;;  %275 = vrot.lane.b32.xlu1 %v263_v6, %s771_s11  ;;  %v262_v7 = vld [vmem:[#allocation2 + $0x9] sm:$0xff]  ;;  %v466_v5 = vld [vmem:[%s937_s2 + $0x1] sm:$0x1] }
  0xce   : > { %v260_v16 = vld [vmem:[#allocation2 + $0x8] sm:$0xff] }
  0xd5   : > { %269 = vrot.lane.b32.xlu1 %v262_v7, %s770_s10  ;;  %s213_s10 = sand.u32 1, %s759_s19  }
  0xd6   : > { %s634_s11 = sshll.u32 %s213_s10, 3  ;;  %s556_s25 = scalar_lea.sflag [#allocation4], %s213_s10 }
  0xd7   : > { %s215_s16 = scalar_lea.vmem [#allocation3], %s634_s11 }
  0xd8   : > { %s568_s17 = sshll.u32 %s215_s16, 4  ;;  %s569_s17 = int_to_ptr.vmem [resolvable:$true] %s568_s17 }
 0x127   : > { %v278_v17 = vpop.permute.xlu2 %277 }
 0x137   : > { %v268_v10 = vpop.permute.xlu0 %267 }
 0x138   : > { %v281_v12 = vsel %vm256_vm1, %v259_v11, %v268_v10 }
 0x13f   : > { %v276_v13 = vpop.permute.xlu1 %275 }
 0x140   : > { %v284_v14 = vsel %vm283_vm3, %v281_v12, %v276_v13 }
 0x141   : > { %637 = vmatmul.msk.f32.vlgmr.msra.gmra.mxu0 %vm290_vm4, %v284_v14 }
 0x147   : > { %v270_v15 = vpop.permute.xlu1 %269 }
 0x148   : > { %v282_v18 = vsel %vm256_vm1, %v260_v16, %v270_v15 }
 0x149   : > { %v285_v19 = vsel %vm283_vm3, %v282_v18, %v278_v17 }
 0x14a   : > { %638 = vmatmul.msk.f32.gmra.mxu0 %vm290_vm4, %v285_v19 }
 0x1be   : > { %v318_v21 = vpop.f32.mrf.mxu0 }
 0x1bf   : > { %v874_v23 = vadd.f32 %v692_v22, %v318_v21 }
 0x1c1   : > { %v333_v25 = vmul.f32 %v874_v23, %v874_v23  ;;  %v324_v27 = vsel %vm283_vm3, %v874_v23, 0.0 }
 0x1c3   : > { %v335_v31 = vsel %vm283_vm3, %v333_v25, 0.0 }
 0x1c7   : > { %v321_v24 = vpop.f32.mrf.mxu0 }
 0x1c8   : > { %v878_v26 = vadd.f32 %v692_v22, %v321_v24 }
 0x1ca   : > { %v325_v28 = vsel %vm283_vm3, %v878_v26, 0.0  ;;  %v334_v29 = vmul.f32 %v878_v26, %v878_v26 }
 0x1cb   : > { %v326_v30 = vadd.f32 %v325_v28, %v324_v27 }
 0x1cc   : > { %v336_v32 = vsel %vm283_vm3, %v334_v29, 0.0 }
 0x1cd   : > { %v327_v33 = vrot.slane %v326_v30, 4  ;;  %v337_v34 = vadd.f32 %v336_v32, %v335_v31 }
 0x1cf   : > { %v328_v35 = vadd.f32 %v327_v33, %v326_v30  ;;  %v338_v36 = vrot.slane %v337_v34, 4 }
 0x1d1   : > { %v329_v37 = vrot.slane %v328_v35, 2  ;;  %v339_v38 = vadd.f32 %v338_v36, %v337_v34 }
 0x1d3   : > { %v330_v39 = vadd.f32 %v329_v37, %v328_v35  ;;  %v340_v40 = vrot.slane %v339_v38, 2 }
 0x1d5   : > { %v331_v41 = vrot.slane %v330_v39, 1  ;;  %v341_v42 = vadd.f32 %v340_v40, %v339_v38 }
 0x1d7   : > { %v332_v43 = vadd.f32 %v331_v41, %v330_v39  ;;  %v342_v44 = vrot.slane %v341_v42, 1 }
 0x1d9   : > { %639 = vmatmul.msk.f32.vlgmr.msra.gmra.mxu1 %vm283_vm3, %v332_v43  ;;  %v343_v45 = vadd.f32 %v342_v44, %v341_v42 }
 0x1db   : > { %640 = vmatmul.msk.f32.vlgmr.msra.gmra.mxu2 %vm283_vm3, %v343_v45  ;;  %vm553_vm3 = vcmask 130048  }
 0x256   : > { %v365_v54 = vpop.f32.mrf.mxu1 }
 0x257   : > { %v398_v55 = vmul.f32 %v397_v53, %v365_v54 }
 0x259   : > { %642 = vmatmul.msk.f32.vlgmr.msra.gmra.mxu3 %vm415_vm7, %v398_v55  ;;  %v400_v57 = vmul.f32 %v398_v55, %v398_v55 }
 0x25e   : > { %v388_v56 = vpop.f32.mrf.mxu2 }
 0x25f   : > { %v399_v58 = vmul.f32 %v397_v53, %v388_v56 }
 0x261   : > { %v401_v59 = vsub.f32 %v399_v58, %v400_v57 }
 0x263   : > { %v402_v60 = vmax.f32 %v401_v59, 0.0 }
 0x265   : > { %v403_v61 = vadd.f32 1e-05, %v402_v60 }
 0x267   : > { %695 = vrsqrt.f32 %v403_v61  ;;  %vm410_vm9 = vweird.f32 %v403_v61 }
 0x26d   : > { %v696_v62 = vpop.eup %695 }
 0x26e   : > { %v405_v63 = vmul.f32 %v696_v62, %v403_v61  ;;  %vm411_vm8 = vweird.f32 %v696_v62 }
 0x26f   : > { %vm412_vm10 = vmor %vm410_vm9, %vm411_vm8 }
 0x270   : > { %v406_v0 = vmul.f32 %v696_v62, %v405_v63 }
 0x272   : > { %v407_v1 = vmul.f32 0.5, %v406_v0 }
 0x274   : > { %v408_v2 = vsub.f32 1.5, %v407_v1 }
 0x276   : > { %v409_v3 = vmul.f32 %v696_v62, %v408_v2 }
 0x278   : > { %v413_v4 = vsel %vm412_vm10, %v696_v62, %v409_v3 }
 0x279   : > { %644 = vmatmul.msk.f32.vlgmr.msrb.gmra.mxu1 %vm415_vm7, %v413_v4 }
 0x2dc   : > { %v440_v8 = vpop.f32.mrf.mxu3 }
 0x2f6   : > { %v463_v6 = vpop.f32.mrf.mxu1 }
 0x2f7   : > { %v467_v7 = vmul.f32 %v466_v5, %v463_v6 }
 0x2f9   : > { %v469_v10 = vmul.f32 %v467_v7, %v440_v8  ;;  %v471_v11 = vperm.slane %v467_v7, 0 }
 0x2fb   : > { %v470_v12 = vsub.f32 %v468_v9, %v469_v10  ;;  %v472_v13 = vmul.f32 %v471_v11, %v874_v23  ;;  %v473_v14 = vmul.f32 %v471_v11, %v878_v26 }
 0x2fd   : > { %v474_v15 = vperm.slane %v470_v12, 0 }
 0x2ff   : > { %v476_v16 = vadd.f32 %v474_v15, %v473_v14  ;;  %v475_v17 = vadd.f32 %v474_v15, %v472_v13 }
 0x301   : > { %v479_v18 = vmul.f32 1.442695, %v476_v16  ;;  %v477_v19 = vmul.f32 1.442695, %v475_v17  ;;  %v481_v40 = vmul.f32 2.0, %v475_v17  ;;  %v482_v51 = vmul.f32 2.0, %v476_v16 }
 0x303   : > { %697 = vpow2.f32 %v479_v18 }
 0x304   : > { %699 = vpow2.f32 %v477_v19 }
 0x309   : > { %v698_v20 = vpop.eup %697 }
 0x30a   : > { %v700_v21 = vpop.eup %699  ;;  %v484_v22 = vadd.f32 2.0, %v698_v20 }
 0x30b   : > { %v483_v24 = vadd.f32 2.0, %v700_v21 }
 0x30c   : > { %v486_v25 = vmul.f32 %v698_v20, %v484_v22 }
 0x30d   : > { %v485_v27 = vmul.f32 %v700_v21, %v483_v24 }
 0x30e   : > { %v488_v28 = vadd.f32 2.0, %v486_v25 }
 0x30f   : > { %v487_v29 = vadd.f32 2.0, %v485_v27 }
 0x310   : > { %701 = vrcp.f32 %v488_v28  ;;  %v515_v42 = vand.u32 2147483648, %v488_v28  ;;  %vm509_vm0 = vweird.f32 %v488_v28  ;;  %v513_v44 = vand.u32 2147483647, %v488_v28 }
 0x311   : > { %703 = vrcp.f32 %v487_v29  ;;  %v500_v34 = vand.u32 2147483648, %v487_v29  ;;  %v498_v37 = vand.u32 2147483647, %v487_v29  ;;  %vm494_vm12 = vweird.f32 %v487_v29 }
 0x312   : > { %v516_v48 = vor.u32 1.1754944e-38, %v515_v42  ;;  %vm514_vm2 = vcmp.eq.f32.partialorder %v513_v44, 8.507059e+37 }
 0x313   : > { %v501_v41 = vor.u32 1.1754944e-38, %v500_v34  ;;  %vm499_vm15 = vcmp.eq.f32.partialorder %v498_v37, 8.507059e+37 }
 0x316   : > { %v702_v23 = vpop.eup %701 }
 0x317   : > { %v704_v30 = vpop.eup %703  ;;  %v505_v26 = vmul.f32 %v702_v23, %v488_v28  ;;  %vm510_vm13 = vweird.f32 %v702_v23 }
 0x318   : > { %v490_v31 = vmul.f32 %v704_v30, %v487_v29  ;;  %vm495_vm11 = vweird.f32 %v704_v30  ;;  %vm511_vm1 = vmor %vm509_vm0, %vm510_vm13 }
 0x319   : > { %v506_v32 = vsub.f32 1.0, %v505_v26  ;;  %vm496_vm14 = vmor %vm494_vm12, %vm495_vm11 }
 0x31a   : > { %v491_v33 = vsub.f32 1.0, %v490_v31 }
 0x31b   : > { %v507_v35 = vmul.f32 %v702_v23, %v506_v32 }
 0x31c   : > { %v492_v36 = vmul.f32 %v704_v30, %v491_v33 }
 0x31d   : > { %v508_v39 = vadd.f32 %v702_v23, %v507_v35 }
 0x31e   : > { %v493_v38 = vadd.f32 %v704_v30, %v492_v36 }
 0x31f   : > { %v512_v47 = vsel %vm511_vm1, %v702_v23, %v508_v39 }
 0x320   : > { %v497_v43 = vsel %vm496_vm14, %v704_v30, %v493_v38  ;;  %v517_v50 = vsel %vm514_vm2, %v516_v48, %v512_v47 }
 0x321   : > { %v502_v45 = vsel %vm499_vm15, %v501_v41, %v497_v43  ;;  %v518_v52 = vmul.f32 %v517_v50, %v482_v51 }
 0x322   : > { %v503_v46 = vmul.f32 %v502_v45, %v481_v40 }
 0x323   : > { %v520_v53 = vsub.f32 %v476_v16, %v518_v52 }
 0x324   : > { %v519_v49 = vsub.f32 %v475_v17, %v503_v46 }
 0x326   : > { %521 = vxpose.xlu2.b32.start [1/2] (short) (narrow) %v519_v49, 8 }
 0x32e   : > { %522 = vxpose.xlu2.b32.end [2/2] (short) (narrow) %v520_v53, 8 }
 0x3bf   : > { %v537_v54 = vpop.trf.xlu2 }
 0x3c0   : > { %554 = vst.msk [vmem:[%s215_s16] sm:$0xff] %vm553_vm3, %v537_v54 }
 0x3c1   : > { %732 = shalt.err (!%p729_p3)
}
 0x3c2   : > { %649 = dma.vmem_to_hbm [thread:$0]  (%p841_p5), %s569_s17, 128, %s571_s23, %s556_s25  }
 0x3c3 PF: > { %p655_p4 = scmp.ge.s32.totalorder %s767_s21, 2  ;;  %s582_s10 = sand.u32 1, %s755_s18  }
 0x3c4   : > { %s583_s11 = scalar_lea.sflag [#allocation4], %s582_s10 }
 0x3c5   : > { %p652_p7 = pnand %p655_p4, %p845_p6 }
 0x3c7   : > { %p653_p8 = pneg %p652_p7 }
 0x3c9   : > { %750 = dma.done.wait (%p653_p8), %s583_s11, 128  }
 0x3ca   : > { %752 = vsyncadd (%p653_p8), %s583_s11, 4294967168  ;;  %p15_p9 = scmp.ge.s32.totalorder %s828_s24, 4   ;;  %s943_s18 = smov %s759_s19 }
 0x3cb   : > { %s944_s19 = smov %s763_s20  ;;  %s945_s20 = smov %s839_s27 }
 0x3cc   : > { %s946_s21 = smov %s828_s24  ;;  %17 = sbr.rel (!%p15_p9) target bundleno = 3 (0x3), region = 75 }
 0x3d1   :  { %589 = vsyncpa [#allocation4], 1 }
 0x3d2   :  { %591 = vsyncpa [#allocation4 + $0x1], 1 }

</bundles_post_ra>
